<compile_context>
chip_gen: v6e
topology: v6e:2x2x1
jax: 0.10.0
libtpu: 0.0.40
codegen_flags: <defaults>
</compile_context>

<pallas_src>
import functools

import jax
import jax.numpy as jnp
from jax import lax
from jax.experimental import pallas as pl
from jax.experimental.pallas import tpu as pltpu

_LANE = 128


def _round_up(x, m):
    return (x + m - 1) // m * m


def _choose_tile_m(M, D, Ep, itemsize, vmem_budget_bytes=20 * 1024 * 1024):
    """Largest row tile (multiple of 256, <= 2048) whose double-buffered
    working set fits the VMEM budget. Tiny problems use a single block."""
    if M <= 256:
        return M
    resident = 2 * Ep * D * itemsize + 2 * Ep * itemsize  # weight + bias buffers
    best = 256
    for t in range(256, 2048 + 256, 256):
        if t > M:
            break
        need = resident + 2 * t * D * itemsize + 2 * t * Ep * itemsize
        if need <= vmem_budget_bytes:
            best = t
    return best


def _projection_kernel(x_ref, w_ref, b_ref, o_ref):
    # x_ref: (TILE_M, D), w_ref: (Ep, D) in nn.Linear layout, b_ref: (1, Ep).
    # Contract on D of both operands -> no wrapper-side weight transpose.
    acc = lax.dot_general(
        x_ref[...],
        w_ref[...],
        dimension_numbers=(((1,), (1,)), ((), ())),
        preferred_element_type=jnp.float32,
    )
    o_ref[...] = (acc + b_ref[...]).astype(o_ref.dtype)


@functools.partial(jax.jit, static_argnames=("patch_size",))
def patch_embedding_forward(x, weight, bias, *, patch_size):
    """Replicates PatchEmbedding.forward.

    x:      (B, C, H, W) float32
    weight: (E, D)       float32   (PyTorch nn.Linear weight, D = p*p*C)
    bias:   (E,)         float32
    """
    B, C, H, W = x.shape
    p = patch_size
    gh, gw = H // p, W // p
    D = p * p * C
    N = gh * gw
    E = weight.shape[0]

    # unfold(2,p,p).unfold(3,p,p).contiguous().view(B, -1, p*p*C):
    # row-major flatten of the (B, C, gh, gw, p, p) tensor — bit-exact with
    # PyTorch's view semantics. Pure layout; XLA may fuse it into the
    # pallas_call input via allow_input_fusion below.
    patches = x.reshape(B, C, gh, p, gw, p).transpose(0, 1, 2, 4, 3, 5)
    x2d = patches.reshape(B * N, D)
    M = B * N

    # Lane-dense output: pad E up to a multiple of 128 so stores are unmasked.
    Ep = _round_up(E, _LANE)
    if Ep != E:
        weight = jnp.pad(weight, ((0, Ep - E), (0, 0)))
        bias = jnp.pad(bias, (0, Ep - E))
    b2d = bias.reshape(1, Ep)

    itemsize = jnp.dtype(x.dtype).itemsize
    tile_m = _choose_tile_m(M, D, Ep, itemsize)
    grid_m = pl.cdiv(M, tile_m)

    # Double-buffered row/output tiles + resident weight & bias, with headroom.
    est = (2 * tile_m * D + 2 * tile_m * Ep + 2 * Ep * D + 2 * Ep) * itemsize
    vmem_limit = int(min(max(2 * est, 32 * 1024 * 1024), 48 * 1024 * 1024))

    out2d = pl.pallas_call(
        _projection_kernel,
        out_shape=jax.ShapeDtypeStruct((M, Ep), x.dtype),
        grid=(grid_m,),
        in_specs=[
            pl.BlockSpec((tile_m, D), lambda i: (i, 0)),  # streamed row tiles
            pl.BlockSpec((Ep, D), lambda i: (0, 0)),      # weight: VMEM-resident
            pl.BlockSpec((1, Ep), lambda i: (0, 0)),      # bias:   VMEM-resident
        ],
        out_specs=pl.BlockSpec((tile_m, Ep), lambda i: (i, 0)),
        compiler_params=pltpu.CompilerParams(
            # Row tiles are independent: shard across TensorCores on v7x.
            dimension_semantics=("parallel",),
            vmem_limit_bytes=vmem_limit,
            # Allow XLA to fold the unfold/transpose producer of x2d into the
            # kernel's input stream (avoids an extra HBM round trip).
            allow_input_fusion=[True, False, False],
        ),
    )(x2d, weight, b2d)

    return out2d[:, :E].reshape(B, N, E)


if __name__ == "__main__":
    # Small shapes consistent with the module.
    img_size = 16
    patch_size = 4
    in_channels = 4
    embed_dim = 32
    batch = 2

    D = patch_size * patch_size * in_channels  # 64

    key = jax.random.PRNGKey(0)
    kx, kw, kb = jax.random.split(key, 3)

    x = jax.random.normal(
        kx, (batch, in_channels, img_size, img_size), dtype=jnp.float32
    )

    # Deterministic params, matching nn.Linear init scheme (uniform +/- 1/sqrt(D)).
    bound = 1.0 / (D ** 0.5)
    weight = jax.random.uniform(
        kw, (embed_dim, D), dtype=jnp.float32, minval=-bound, maxval=bound
    )
    bias = jax.random.uniform(
        kb, (embed_dim,), dtype=jnp.float32, minval=-bound, maxval=bound
    )

    out = patch_embedding_forward(x, weight, bias, patch_size=patch_size)
    out = jax.block_until_ready(out)

    # Sanity check against a pure-JAX reference of the same semantics
    # (same row-major flatten as PyTorch's unfold/contiguous/view).
    gh = img_size // patch_size
    ref_patches = x.reshape(batch, in_channels, gh, patch_size, gh, patch_size)
    ref_patches = ref_patches.transpose(0, 1, 2, 4, 3, 5).reshape(batch, -1, D)
    ref = ref_patches @ weight.T + bias
    assert out.shape == (batch, gh * gh, embed_dim), out.shape
    assert jnp.allclose(out, ref, atol=1e-4, rtol=1e-4)

    print("KERNEL_OK")
</pallas_src>

<mosaic_0001>
module attributes {stable_mosaic.version = 11 : i64} {
  func.func @_projection_kernel(%arg0: i32, %arg1: memref<32x64xf32, #tpu.memory_space<vmem>>, %arg2: memref<128x64xf32, #tpu.memory_space<vmem>>, %arg3: memref<1x128xf32, #tpu.memory_space<vmem>>, %arg4: memref<32x128xf32, #tpu.memory_space<vmem>>) attributes {dimension_semantics = [#tpu.dimension_semantics<parallel>], iteration_bounds = array<i64: 1>, scalar_prefetch = 0 : i64, scratch_operands = 0 : i64, tpu.core_type = #tpu.core_type<tc>, window_params = [{transform_indices = @transform_0, window_bounds = array<i64: 32, 64>}, {pipeline_mode = #tpu.pipeline_mode<synchronous>, transform_indices = @transform_1, window_bounds = array<i64: 128, 64>}, {pipeline_mode = #tpu.pipeline_mode<synchronous>, transform_indices = @transform_2, window_bounds = array<i64: 1, 128>}, {transform_indices = @transform_3, window_bounds = array<i64: 32, 128>}]} {
    %c0 = arith.constant 0 : index
    %c0_0 = arith.constant 0 : index
    %0 = vector.load %arg1[%c0, %c0_0] : memref<32x64xf32, #tpu.memory_space<vmem>>, vector<32x64xf32>
    %c0_1 = arith.constant 0 : index
    %c0_2 = arith.constant 0 : index
    %1 = vector.load %arg2[%c0_1, %c0_2] : memref<128x64xf32, #tpu.memory_space<vmem>>, vector<128x64xf32>
    %cst = arith.constant dense<0.000000e+00> : vector<32x128xf32>
    %2 = tpu.matmul %0, %1, %cst {dimension_numbers = #tpu.dot_dimension_numbers<[1], [1], [0], [0], [0, 0, 1, 0], [], []>} : vector<32x64xf32>, vector<128x64xf32>, vector<32x128xf32> -> vector<32x128xf32>
    %c0_3 = arith.constant 0 : index
    %c0_4 = arith.constant 0 : index
    %3 = vector.load %arg3[%c0_3, %c0_4] : memref<1x128xf32, #tpu.memory_space<vmem>>, vector<1x128xf32>
    %4 = vector.broadcast %3 : vector<1x128xf32> to vector<32x128xf32>
    %5 = arith.addf %2, %4 : vector<32x128xf32>
    %c0_5 = arith.constant 0 : index
    %c0_6 = arith.constant 0 : index
    %6 = vector.load %arg4[%c0_5, %c0_6] : memref<32x128xf32, #tpu.memory_space<vmem>>, vector<32x128xf32>
    tpu.vector_store %arg4[%c0_5, %c0_6], %5 {strides = array<i32>} : memref<32x128xf32, #tpu.memory_space<vmem>>, vector<32x128xf32>,
    return
  }
  func.func @transform_0(%arg0: i32) -> (i32, i32) {
    %c0_i32 = arith.constant 0 : i32
    %c0_i32_0 = arith.constant 0 : i32
    return %arg0, %c0_i32 : i32, i32
  }
  func.func @transform_1(%arg0: i32) -> (i32, i32) {
    %c0_i32 = arith.constant 0 : i32
    %c0_i32_0 = arith.constant 0 : i32
    %c0_i32_1 = arith.constant 0 : i32
    return %c0_i32, %c0_i32_0 : i32, i32
  }
  func.func @transform_2(%arg0: i32) -> (i32, i32) {
    %c0_i32 = arith.constant 0 : i32
    %c0_i32_0 = arith.constant 0 : i32
    %c0_i32_1 = arith.constant 0 : i32
    return %c0_i32, %c0_i32_0 : i32, i32
  }
  func.func @transform_3(%arg0: i32) -> (i32, i32) {
    %c0_i32 = arith.constant 0 : i32
    %c0_i32_0 = arith.constant 0 : i32
    return %arg0, %c0_i32 : i32, i32
  }
}

</mosaic_0001>

<bundles_post_ra>
// kernel: patch_embedding_forward.1
= control target key start
LH: loop header
LB: loop body
LE: loop exit
PB: predicated region body
PF: predicated region fallthrough
CT: control target
= control target key end

     0   :  { %vm42_vm0 = vcmask 523264   ;;  %s501_s0 = inlined_call_operand.vmem [shape: f32[32,64], index: 0, kind: input, shape index: {}]   ;;  %s502_s1 = inlined_call_operand.vmem [shape: f32[128,64], index: 1, kind: input, shape index: {}]   ;;  %s503_s2 = inlined_call_operand.vmem [shape: f32[1,128], index: 2, kind: input, shape index: {}]   ;;  %s504_s3 = inlined_call_operand.hbm [shape: f32[32,128], index: 3, kind: output, shape index: {}]  }
   0x1   :  { %v34_v0 = vld [vmem:[%s502_s1 + $0x78] sm:$0xff]  ;;  %v33_v1 = vld [vmem:[%s502_s1 + $0x70] sm:$0xff]  ;;  %v32_v2 = vld [vmem:[%s502_s1 + $0x68] sm:$0xff] }
   0x2   :  { %249 = vmatprep.subr.msk.mxu0 %vm42_vm0, %v34_v0  ;;  %287 = vmatprep.subr.msk.mxu1 %vm42_vm0, %v34_v0  ;;  %v15_v3 = vld [vmem:[%s501_s0] sm:$0xff]  ;;  %v17_v4 = vld [vmem:[%s501_s0 + $0x10] sm:$0xff] }
   0x3   :  { %250 = vmatpush3.xpose.msk.msra.mxu0 %vm42_vm0, %v34_v0  ;;  %303 = vmatpush3.xpose.msk.msra.mxu1 %vm42_vm0, %v34_v0 }
   0x4   :  { %251 = vmatprep.subr.msk.mxu0 %vm42_vm0, %v33_v1  ;;  %288 = vmatprep.subr.msk.mxu1 %vm42_vm0, %v33_v1 }
   0x7   :  { %252 = vmatpush3.xpose.msk.msra.mxu0 %vm42_vm0, %v33_v1  ;;  %304 = vmatpush3.xpose.msk.msra.mxu1 %vm42_vm0, %v33_v1 }
   0x8   :  { %8 = vsyncpa [#allocation3], 0  ;;  %253 = vmatprep.subr.msk.mxu0 %vm42_vm0, %v32_v2  ;;  %289 = vmatprep.subr.msk.mxu1 %vm42_vm0, %v32_v2  ;;  %v31_v5 = vld [vmem:[%s502_s1 + $0x60] sm:$0xff]  ;;  %v30_v6 = vld [vmem:[%s502_s1 + $0x58] sm:$0xff]  ;;  %s344_s26 = smov [#allocation2]  }
   0x9   :  { %281 = vmatprep.mubr.msk.f32.mxu0 %vm42_vm0, %v15_v3  ;;  %284 = vmatprep.mubr.msk.f32.mxu1 %vm42_vm0, %v17_v4  ;;  %v29_v7 = vld [vmem:[%s502_s1 + $0x50] sm:$0xff]  ;;  %v28_v8 = vld [vmem:[%s502_s1 + $0x48] sm:$0xff]  ;;  %v27_v9 = vld [vmem:[%s502_s1 + $0x40] sm:$0xff]  ;;  %s197_s27 = sshll.u32 %s344_s26, 4  ;;  %s198_s27 = int_to_ptr.vmem [resolvable:$true] %s197_s27 }
   0xa   :  { %v26_v10 = vld [vmem:[%s502_s1 + $0x38] sm:$0xff]  ;;  %v25_v11 = vld [vmem:[%s502_s1 + $0x30] sm:$0xff]  ;;  %v24_v12 = vld [vmem:[%s502_s1 + $0x28] sm:$0xff]  ;;  %p327_p1 = scmp.lt.s32.totalorder %s198_s27, %s198_s27 }
   0xb   :  { %254 = vmatpush3.xpose.msk.msra.mxu0 %vm42_vm0, %v32_v2  ;;  %305 = vmatpush3.xpose.msk.msra.mxu1 %vm42_vm0, %v32_v2  ;;  %v23_v13 = vld [vmem:[%s502_s1 + $0x20] sm:$0xff]  ;;  %v22_v14 = vld [vmem:[%s502_s1 + $0x18] sm:$0xff]  ;;  %v21_v15 = vld [vmem:[%s502_s1 + $0x10] sm:$0xff] }
   0xc   :  { %255 = vmatprep.subr.msk.mxu0 %vm42_vm0, %v31_v5  ;;  %290 = vmatprep.subr.msk.mxu1 %vm42_vm0, %v31_v5  ;;  %v20_v16 = vld [vmem:[%s502_s1 + $0x8] sm:$0xff]  ;;  %v19_v17 = vld [vmem:[%s502_s1] sm:$0xff]  ;;  %v18_v19 = vld [vmem:[%s501_s0 + $0x18] sm:$0xff] }
   0xd   :  { %v16_v18 = vld [vmem:[%s501_s0 + $0x8] sm:$0xff]  ;;  %v208_v20 = vld [vmem:[%s503_s2] ss:$0 sm:$0xff]  ;;  %s322_s0 = scalar_lea.vmem %s198_s27, 512 }
   0xe   :  { %p323_p0 = scmp.ne.s32.totalorder %s198_s27, %s322_s0  ;;  %p328_p2 = scmp.lt.s32.totalorder %s322_s0, %s322_s0 }
   0xf   :  { %256 = vmatpush3.xpose.msk.msra.mxu0 %vm42_vm0, %v31_v5  ;;  %306 = vmatpush3.xpose.msk.msra.mxu1 %vm42_vm0, %v31_v5 }
  0x10   :  { %257 = vmatprep.subr.msk.mxu0 %vm42_vm0, %v30_v6  ;;  %291 = vmatprep.subr.msk.mxu1 %vm42_vm0, %v30_v6  ;;  %p329_p3 = por %p328_p2, %p327_p1 }
  0x12   :  { %p330_p4 = pnand %p329_p3, %p323_p0 }
  0x13   :  { %258 = vmatpush3.xpose.msk.msra.mxu0 %vm42_vm0, %v30_v6  ;;  %307 = vmatpush3.xpose.msk.msra.mxu1 %vm42_vm0, %v30_v6 }
  0x14   :  { %259 = vmatprep.subr.msk.mxu0 %vm42_vm0, %v29_v7  ;;  %292 = vmatprep.subr.msk.mxu1 %vm42_vm0, %v29_v7 }
  0x17   :  { %260 = vmatpush3.xpose.msk.msra.mxu0 %vm42_vm0, %v29_v7  ;;  %308 = vmatpush3.xpose.msk.msra.mxu1 %vm42_vm0, %v29_v7 }
  0x18   :  { %261 = vmatprep.subr.msk.mxu0 %vm42_vm0, %v28_v8  ;;  %293 = vmatprep.subr.msk.mxu1 %vm42_vm0, %v28_v8 }
  0x1b   :  { %262 = vmatpush3.xpose.msk.msra.mxu0 %vm42_vm0, %v28_v8  ;;  %309 = vmatpush3.xpose.msk.msra.mxu1 %vm42_vm0, %v28_v8 }
  0x1c   :  { %263 = vmatprep.subr.msk.mxu0 %vm42_vm0, %v27_v9  ;;  %294 = vmatprep.subr.msk.mxu1 %vm42_vm0, %v27_v9 }
  0x1f   :  { %264 = vmatpush3.xpose.msk.msra.mxu0 %vm42_vm0, %v27_v9  ;;  %310 = vmatpush3.xpose.msk.msra.mxu1 %vm42_vm0, %v27_v9 }
  0x20   :  { %265 = vmatprep.subr.msk.mxu0 %vm42_vm0, %v26_v10  ;;  %295 = vmatprep.subr.msk.mxu1 %vm42_vm0, %v26_v10 }
  0x23   :  { %266 = vmatpush3.xpose.msk.msra.mxu0 %vm42_vm0, %v26_v10  ;;  %311 = vmatpush3.xpose.msk.msra.mxu1 %vm42_vm0, %v26_v10 }
  0x24   :  { %267 = vmatprep.subr.msk.mxu0 %vm42_vm0, %v25_v11  ;;  %296 = vmatprep.subr.msk.mxu1 %vm42_vm0, %v25_v11 }
  0x27   :  { %268 = vmatpush3.xpose.msk.msra.mxu0 %vm42_vm0, %v25_v11  ;;  %312 = vmatpush3.xpose.msk.msra.mxu1 %vm42_vm0, %v25_v11 }
  0x28   :  { %269 = vmatprep.subr.msk.mxu0 %vm42_vm0, %v24_v12  ;;  %297 = vmatprep.subr.msk.mxu1 %vm42_vm0, %v24_v12 }
  0x2b   :  { %270 = vmatpush3.xpose.msk.msra.mxu0 %vm42_vm0, %v24_v12  ;;  %313 = vmatpush3.xpose.msk.msra.mxu1 %vm42_vm0, %v24_v12 }
  0x2c   :  { %271 = vmatprep.subr.msk.mxu0 %vm42_vm0, %v23_v13  ;;  %298 = vmatprep.subr.msk.mxu1 %vm42_vm0, %v23_v13 }
  0x2f   :  { %272 = vmatpush3.xpose.msk.msra.mxu0 %vm42_vm0, %v23_v13  ;;  %314 = vmatpush3.xpose.msk.msra.mxu1 %vm42_vm0, %v23_v13 }
  0x30   :  { %273 = vmatprep.subr.msk.mxu0 %vm42_vm0, %v22_v14  ;;  %299 = vmatprep.subr.msk.mxu1 %vm42_vm0, %v22_v14 }
  0x33   :  { %274 = vmatpush3.xpose.msk.msra.mxu0 %vm42_vm0, %v22_v14  ;;  %315 = vmatpush3.xpose.msk.msra.mxu1 %vm42_vm0, %v22_v14 }
  0x34   :  { %275 = vmatprep.subr.msk.mxu0 %vm42_vm0, %v21_v15  ;;  %300 = vmatprep.subr.msk.mxu1 %vm42_vm0, %v21_v15 }
  0x37   :  { %276 = vmatpush3.xpose.msk.msra.mxu0 %vm42_vm0, %v21_v15  ;;  %316 = vmatpush3.xpose.msk.msra.mxu1 %vm42_vm0, %v21_v15 }
  0x38   :  { %277 = vmatprep.subr.msk.mxu0 %vm42_vm0, %v20_v16  ;;  %301 = vmatprep.subr.msk.mxu1 %vm42_vm0, %v20_v16 }
  0x3b   :  { %278 = vmatpush3.xpose.msk.msra.mxu0 %vm42_vm0, %v20_v16  ;;  %317 = vmatpush3.xpose.msk.msra.mxu1 %vm42_vm0, %v20_v16 }
  0x3c   :  { %279 = vmatprep.subr.msk.mxu0 %vm42_vm0, %v19_v17  ;;  %302 = vmatprep.subr.msk.mxu1 %vm42_vm0, %v19_v17 }
  0x3f   :  { %280 = vmatpush3.xpose.msk.msra.mxu0 %vm42_vm0, %v19_v17  ;;  %318 = vmatpush3.xpose.msk.msra.mxu1 %vm42_vm0, %v19_v17 }
  0x42   :  { %282 = vmatmul.mubr.msk.f32.vlgmr.msra.gmra.mxu0 %vm42_vm0, %v16_v18  ;;  %285 = vmatmul.mubr.msk.f32.vlgmr.msra.gmra.mxu1 %vm42_vm0, %v18_v19 }
 0x102   :  { %v283_v21 = vpop.f32.mrf.mxu0  ;;  %v286_v22 = vpop.f32.mrf.mxu1 }
 0x103   :  { %v175_v23 = vadd.f32 %v283_v21, %v208_v20  ;;  %v185_v24 = vadd.f32 %v286_v22, %v208_v20 }
 0x104   :  { %v169_v25 = vpop.f32.mrf.mxu0  ;;  %v179_v26 = vpop.f32.mrf.mxu1 }
 0x105   :  { %189 = vst [vmem:[#allocation2 + $0x8] sm:$0xff] %v175_v23  ;;  %191 = vst [vmem:[#allocation2 + $0x18] sm:$0xff] %v185_v24  ;;  %v170_v27 = vadd.f32 %v208_v20, %v169_v25  ;;  %v180_v28 = vadd.f32 %v208_v20, %v179_v26 }
 0x107   :  { %188 = vst [vmem:[#allocation2] sm:$0xff] %v170_v27  ;;  %190 = vst [vmem:[#allocation2 + $0x10] sm:$0xff] %v180_v28 }
 0x108   :  { %333 = shalt.err (!%p330_p4)
}
 0x109   :  { %s345_s2 = smov 128   ;;  %s346_s28 = smov 8  }
 0x10a   :  { %203 = dma.vmem_to_hbm [thread:$0]  %s198_s27, 512, %s504_s3, [#allocation3], %s345_s2, %s345_s2, %s346_s28  }
 0x10b   :  { %342 = dma.done.wait [#allocation3], 512  }
 0x10c   :  { %343 = vsyncadd [#allocation3], 4294966784 }
 0x10d   :  { %207 = vsyncpa [#allocation3], 1 }

</bundles_post_ra>
